<compile_context>
chip_gen: v7x
topology: tpu7x:2x2x1
jax: 0.10.0
libtpu: 0.0.40
codegen_flags: <defaults>
</compile_context>

<pallas_src>
import functools

import jax
import jax.numpy as jnp
from jax.experimental import pallas as pl
from jax.experimental.pallas import tpu as pltpu


def _round_up(x, m):
    return (x + m - 1) // m * m


def _largest_div_tile(total, cap, unit=128):
    """Largest multiple of `unit` that divides `total` and is <= cap (>= unit)."""
    best = unit
    d = unit
    hi = min(total, cap)
    while d <= hi:
        if total % d == 0:
            best = d
        d += unit
    return best


def _vmem_budgets():
    """Generation-aware (budget, limit) in bytes.  v7x: ~40/48 MiB; v5e/v6e: ~64/96 MiB."""
    cap = 64 * 1024 * 1024  # conservative (v7x-sized) fallback
    try:
        info = pltpu.get_tpu_info()
        cap = int(getattr(info, "vmem_capacity_bytes", cap))
    except Exception:
        pass
    limit = max(32 * 1024 * 1024, min(cap * 3 // 4, 96 * 1024 * 1024))
    budget = max(16 * 1024 * 1024, min(limit - 8 * 1024 * 1024, 64 * 1024 * 1024))
    return budget, limit


def _apply_act(y, act, has_relu):
    if not has_relu:
        return y
    if act == "ReLU":
        return jnp.maximum(y, 0.0)
    if act == "LeakyReLU":
        return jnp.where(y > 0, y, 0.01 * y)  # PyTorch default negative_slope
    return y * jax.nn.sigmoid(y)  # SiLU


# ----------------------------------------------------------------------------
# Pallas kernels
# ----------------------------------------------------------------------------
def _kernel_single_k(p_ref, w_ref, shift_ref, o_ref, *, act, has_relu):
    # Whole reduction in one block: no accumulator scratch, no pl.when phases.
    y = jnp.dot(p_ref[...], w_ref[...], preferred_element_type=jnp.float32)
    y = y + shift_ref[...]
    o_ref[...] = _apply_act(y, act, has_relu).astype(o_ref.dtype)


def _kernel_multi_k(p_ref, w_ref, shift_ref, o_ref, acc_ref, *, act, has_relu):
    k = pl.program_id(2)

    @pl.when(k == 0)
    def _():
        acc_ref[...] = jnp.zeros_like(acc_ref)

    acc_ref[...] += jnp.dot(p_ref[...], w_ref[...],
                            preferred_element_type=jnp.float32)

    @pl.when(k == pl.num_programs(2) - 1)
    def _():
        y = acc_ref[...] + shift_ref[...]
        o_ref[...] = _apply_act(y, act, has_relu).astype(o_ref.dtype)


# ----------------------------------------------------------------------------
# Fused matmul: out = act(patches @ w_fold + shift)
# ----------------------------------------------------------------------------
def _fused_matmul(patches, w_fold, shift, out_dtype, *, act, has_relu):
    M, K = patches.shape
    K2, Np = w_fold.shape
    assert K == K2 and Np % 128 == 0

    budget, limit = _vmem_budgets()
    in_bytes = jnp.dtype(patches.dtype).itemsize
    out_bytes = jnp.dtype(out_dtype).itemsize

    Mp = _round_up(M, 128)      # tight M padding only (never rounded up to tm)
    Kv = _round_up(K, 128)      # lane-padded K footprint in VMEM (no HBM pad)

    def vmem_est(tm_, tk_, tn_, multi_k):
        est = 2 * (tm_ * tk_ + tk_ * tn_) * in_bytes   # double-buffered operands
        est += 2 * 128 * 4                             # shift row (padded)
        est += 2 * tm_ * tn_ * out_bytes               # double-buffered output
        if multi_k:
            est += tm_ * tn_ * 4                       # f32 accumulator scratch
        return est

    # 1) tn: as wide as possible (ideally tn == Np so patches stream exactly once).
    tn = Np
    while tn > 128 and vmem_est(128, min(Kv, 512), tn, True) > budget:
        tn = _largest_div_tile(Np, tn - 128)

    # 2) single-K fast path (no HBM K-pad, no accumulator) vs K-blocked.
    single_k = vmem_est(128, Kv, tn, False) <= budget
    if single_k:
        tk = K
    else:
        tk = _largest_div_tile(_round_up(K, 128), 512)

    # 3) tm: largest 128-multiple divisor of Mp within budget; keep >= 2 parallel
    #    (i, j) tiles when M allows so v7x's second TensorCore has work.
    tm_cap = 1024
    if (Np // tn) == 1 and Mp >= 256:
        tm_cap = min(tm_cap, Mp // 2)
    tm = _largest_div_tile(Mp, tm_cap)
    while tm > 128 and vmem_est(tm, Kv if single_k else tk, tn, not single_k) > budget:
        tm = _largest_div_tile(Mp, tm - 128)
    if not single_k:
        while tk > 128 and vmem_est(tm, tk, tn, True) > budget:
            tk = _largest_div_tile(_round_up(K, 128), tk - 128)
    while tn > 128 and vmem_est(tm, Kv if single_k else tk, tn, not single_k) > budget:
        tn = _largest_div_tile(Np, tn - 128)

    # --- pad M tightly; pad K only in the K-blocked case and only up to tk -------
    if single_k:
        Kp = K
        if Mp != M:
            patches = jnp.pad(patches, ((0, Mp - M), (0, 0)))
    else:
        Kp = _round_up(K, tk)
        patches = jnp.pad(patches, ((0, Mp - M), (0, Kp - K)))
        w_fold = jnp.pad(w_fold, ((0, Kp - K), (0, 0)))

    grid_i, grid_j = Mp // tm, Np // tn

    # Advisory cost estimate accounting for re-streaming (patches read grid_j
    # times, weights grid_i times under this grid).
    cost = pl.CostEstimate(
        flops=2 * Mp * Kp * Np,
        transcendentals=(Mp * Np if (has_relu and act == "SiLU") else 0),
        bytes_accessed=(Mp * Kp * in_bytes * grid_j
                        + Kp * Np * in_bytes * grid_i
                        + Np * 4 * grid_i
                        + Mp * Np * out_bytes),
    )

    if single_k:
        kernel = functools.partial(_kernel_single_k, act=act, has_relu=has_relu)
        grid = (grid_i, grid_j)
        in_specs = [
            pl.BlockSpec((tm, Kp), lambda i, j: (i, 0)),
            pl.BlockSpec((Kp, tn), lambda i, j: (0, j)),
            pl.BlockSpec((1, tn), lambda i, j: (0, j)),
        ]
        out_specs = pl.BlockSpec((tm, tn), lambda i, j: (i, j))
        scratch = []
        dims = ("parallel", "parallel")
    else:
        kernel = functools.partial(_kernel_multi_k, act=act, has_relu=has_relu)
        grid = (grid_i, grid_j, Kp // tk)
        in_specs = [
            pl.BlockSpec((tm, tk), lambda i, j, k: (i, k)),
            pl.BlockSpec((tk, tn), lambda i, j, k: (k, j)),
            pl.BlockSpec((1, tn), lambda i, j, k: (0, j)),
        ]
        out_specs = pl.BlockSpec((tm, tn), lambda i, j, k: (i, j))
        scratch = [pltpu.VMEM((tm, tn), jnp.float32)]
        dims = ("parallel", "parallel", "arbitrary")

    out = pl.pallas_call(
        kernel,
        out_shape=jax.ShapeDtypeStruct((Mp, Np), out_dtype),
        grid_spec=pltpu.PrefetchScalarGridSpec(
            num_scalar_prefetch=0,
            grid=grid,
            in_specs=in_specs,
            out_specs=out_specs,
            scratch_shapes=scratch,
        ),
        compiler_params=pltpu.CompilerParams(
            dimension_semantics=dims,
            vmem_limit_bytes=int(limit),
        ),
        cost_estimate=cost,
    )(patches, w_fold, shift)

    return out[:M]  # strip M padding; Cout padding stripped by caller


# ----------------------------------------------------------------------------
# Glue: im2col, parameter folding, layout conversion
# ----------------------------------------------------------------------------
def _im2col(x_nhwc, kh, kw, stride, padding, dilation):
    N, H, W, C = x_nhwc.shape
    xp = jnp.pad(x_nhwc, ((0, 0), (padding, padding), (padding, padding), (0, 0)))
    Hp, Wp = H + 2 * padding, W + 2 * padding
    eff_kh = (kh - 1) * dilation + 1
    eff_kw = (kw - 1) * dilation + 1
    Ho = (Hp - eff_kh) // stride + 1
    Wo = (Wp - eff_kw) // stride + 1
    cols = []
    for i in range(kh):
        for j in range(kw):
            hi = i * dilation
            wi = j * dilation
            patch = xp[:, hi:hi + stride * Ho:stride, wi:wi + stride * Wo:stride, :]
            cols.append(patch)  # (N, Ho, Wo, C)
    # K index ordering: (kh, kw, cin)
    cols = jnp.concatenate(cols, axis=-1)  # (N, Ho, Wo, KH*KW*C)
    return cols, Ho, Wo


def conv_bn_relu_forward_nhwc(x_nhwc, params, *, kernel_size, stride, padding,
                              dilation, has_bn=True, has_relu=True, act="ReLU",
                              eps=1e-5, compute_dtype=jnp.bfloat16):
    """NHWC core path.  bf16 operands by default (f32 accumulation + epilogue)."""
    assert act in ("ReLU", "LeakyReLU", "SiLU"), act
    w = params["conv_weight"]          # (Cout, Cin, KH, KW) -- PyTorch layout
    b = params.get("conv_bias", None)  # (Cout,) or None
    Cout, Cin, KH, KW = w.shape
    assert (KH, KW) == (kernel_size, kernel_size)
    assert x_nhwc.shape[-1] == Cin  # TODO(synk): groups != 1 not implemented

    # Cast BEFORE im2col so the duplicated patch stream is written at operand width.
    x_c = x_nhwc.astype(compute_dtype)
    cols, Ho, Wo = _im2col(x_c, KH, KW, stride, padding, dilation)
    N = x_nhwc.shape[0]
    M = N * Ho * Wo
    K = KH * KW * Cin
    patches = cols.reshape(M, K)       # NOT padded in K -> no extra HBM copy

    # Fold conv bias + BN (eval mode, running stats) into per-channel scale/shift;
    # fold the scale into the weights so the kernel epilogue is add + act only.
    if b is None:
        b = jnp.zeros((Cout,), jnp.float32)
    b = b.astype(jnp.float32)
    if has_bn:
        gamma = params["bn_gamma"].astype(jnp.float32)
        beta = params["bn_beta"].astype(jnp.float32)
        mean = params["bn_running_mean"].astype(jnp.float32)
        var = params["bn_running_var"].astype(jnp.float32)
        scale = gamma / jnp.sqrt(var + eps)
        shift = (b - mean) * scale + beta
    else:
        scale = jnp.ones((Cout,), jnp.float32)
        shift = b

    # Weight flattened to match (kh, kw, cin) patch ordering; BN scale folded in f32.
    w_flat = jnp.transpose(w, (2, 3, 1, 0)).reshape(K, Cout).astype(jnp.float32)
    w_fold = w_flat * scale[None, :]

    # Lane-dense output: Cout padded to a multiple of 128 (unmasked vst); the
    # (tiny) weight/shift pads are sliced off after the pallas_call.
    Cout_p = _round_up(Cout, 128)
    w_fold = jnp.pad(w_fold, ((0, 0), (0, Cout_p - Cout))).astype(compute_dtype)
    shift_p = jnp.pad(shift, (0, Cout_p - Cout)).reshape(1, Cout_p).astype(jnp.float32)

    out_flat = _fused_matmul(patches, w_fold, shift_p, x_nhwc.dtype,
                             act=act, has_relu=has_relu)       # (M, Cout_p)
    return out_flat[:, :Cout].reshape(N, Ho, Wo, Cout)


def conv_bn_relu_forward(x_nchw, params, **kwargs):
    """PyTorch-parity NCHW wrapper around the NHWC core path."""
    x_nhwc = jnp.transpose(x_nchw, (0, 2, 3, 1))
    out_nhwc = conv_bn_relu_forward_nhwc(x_nhwc, params, **kwargs)
    return jnp.transpose(out_nhwc, (0, 3, 1, 2))


# ----------------------------------------------------------------------------
# Pure-JAX reference for verification
# ----------------------------------------------------------------------------
def _reference(x_nchw, params, *, stride, padding, dilation, act="ReLU", eps=1e-5):
    w = params["conv_weight"]
    b = params["conv_bias"]
    y = jax.lax.conv_general_dilated(
        x_nchw, w,
        window_strides=(stride, stride),
        padding=((padding, padding), (padding, padding)),
        rhs_dilation=(dilation, dilation),
        dimension_numbers=("NCHW", "OIHW", "NCHW"),
    ) + b[None, :, None, None]
    gamma = params["bn_gamma"][None, :, None, None]
    beta = params["bn_beta"][None, :, None, None]
    mean = params["bn_running_mean"][None, :, None, None]
    var = params["bn_running_var"][None, :, None, None]
    y = (y - mean) / jnp.sqrt(var + eps) * gamma + beta
    if act == "ReLU":
        return jnp.maximum(y, 0.0)
    if act == "LeakyReLU":
        return jnp.where(y > 0, y, 0.01 * y)
    return y * jax.nn.sigmoid(y)  # SiLU


if __name__ == "__main__":
    # Module config: conv_bn_relu(in_planes=4, out_planes=8, kernel_size=3,
    #                             stride=1, padding=1, dilation=1,
    #                             has_bias=True, has_bn=True, has_relu=True)
    in_planes, out_planes = 4, 8
    ksize, stride, padding, dilation = 3, 1, 1, 1
    N, H, W = 2, 16, 16

    key = jax.random.PRNGKey(0)
    k_x, k_w, k_b, k_g, k_be, k_m, k_v = jax.random.split(key, 7)

    x = jax.random.normal(k_x, (N, in_planes, H, W), dtype=jnp.float32)
    params = {
        "conv_weight": 0.1 * jax.random.normal(
            k_w, (out_planes, in_planes, ksize, ksize), dtype=jnp.float32),
        "conv_bias": 0.1 * jax.random.normal(k_b, (out_planes,), dtype=jnp.float32),
        "bn_gamma": 1.0 + 0.1 * jax.random.normal(k_g, (out_planes,), dtype=jnp.float32),
        "bn_beta": 0.1 * jax.random.normal(k_be, (out_planes,), dtype=jnp.float32),
        "bn_running_mean": 0.1 * jax.random.normal(k_m, (out_planes,), dtype=jnp.float32),
        "bn_running_var": 0.5 + jnp.abs(jax.random.normal(k_v, (out_planes,), dtype=jnp.float32)),
    }

    common = dict(kernel_size=ksize, stride=stride, padding=padding, dilation=dilation)

    # --- f32 operands, ReLU (tight check) ------------------------------------
    ref_relu = _reference(x, params, stride=stride, padding=padding,
                          dilation=dilation, act="ReLU")
    fwd_f32 = functools.partial(conv_bn_relu_forward, act="ReLU",
                                compute_dtype=jnp.float32, **common)
    out = jax.block_until_ready(jax.jit(fwd_f32)(x, params))
    assert out.shape == (N, out_planes, H, W), out.shape
    assert jnp.allclose(out, ref_relu, atol=1e-4, rtol=1e-4), "f32 ReLU mismatch"

    # --- bf16 operands (default), f32 accumulation, ReLU (loose check) -------
    fwd_bf16 = functools.partial(conv_bn_relu_forward, act="ReLU", **common)
    out_bf16 = jax.block_until_ready(jax.jit(fwd_bf16)(x, params))
    assert out_bf16.shape == (N, out_planes, H, W), out_bf16.shape
    assert jnp.allclose(out_bf16, ref_relu, atol=5e-2, rtol=5e-2), "bf16 ReLU mismatch"

    # --- f32 operands, SiLU epilogue (exercises the EUP path) ----------------
    ref_silu = _reference(x, params, stride=stride, padding=padding,
                          dilation=dilation, act="SiLU")
    fwd_silu = functools.partial(conv_bn_relu_forward, act="SiLU",
                                 compute_dtype=jnp.float32, **common)
    out_silu = jax.block_until_ready(jax.jit(fwd_silu)(x, params))
    assert jnp.allclose(out_silu, ref_silu, atol=1e-4, rtol=1e-4), "f32 SiLU mismatch"

    print("KERNEL_OK")
</pallas_src>

<mosaic_0001>
module attributes {stable_mosaic.version = 11 : i64} {
  func.func @_kernel_single_k(%arg0: i32, %arg1: i32, %arg2: memref<256x36xf32, #tpu.memory_space<vmem>>, %arg3: memref<36x128xf32, #tpu.memory_space<vmem>>, %arg4: memref<1x128xf32, #tpu.memory_space<vmem>>, %arg5: memref<256x128xf32, #tpu.memory_space<vmem>>) attributes {dimension_semantics = [#tpu.dimension_semantics<parallel>, #tpu.dimension_semantics<parallel>], iteration_bounds = array<i64: 2, 1>, scalar_prefetch = 0 : i64, scratch_operands = 0 : i64, tpu.core_type = #tpu.core_type<tc>, window_params = [{transform_indices = @transform_0, window_bounds = array<i64: 256, 36>}, {transform_indices = @transform_1, window_bounds = array<i64: 36, 128>}, {transform_indices = @transform_2, window_bounds = array<i64: 1, 128>}, {transform_indices = @transform_3, window_bounds = array<i64: 256, 128>}]} {
    %c0 = arith.constant 0 : index
    %c0_0 = arith.constant 0 : index
    %0 = vector.load %arg2[%c0, %c0_0] : memref<256x36xf32, #tpu.memory_space<vmem>>, vector<256x36xf32>
    %c0_1 = arith.constant 0 : index
    %c0_2 = arith.constant 0 : index
    %1 = vector.load %arg3[%c0_1, %c0_2] : memref<36x128xf32, #tpu.memory_space<vmem>>, vector<36x128xf32>
    %cst = arith.constant dense<0.000000e+00> : vector<256x128xf32>
    %2 = tpu.matmul %0, %1, %cst {dimension_numbers = #tpu.dot_dimension_numbers<[1], [0], [0], [1], [0, 0, 1, 1], [], []>} : vector<256x36xf32>, vector<36x128xf32>, vector<256x128xf32> -> vector<256x128xf32>
    %c0_3 = arith.constant 0 : index
    %c0_4 = arith.constant 0 : index
    %3 = vector.load %arg4[%c0_3, %c0_4] : memref<1x128xf32, #tpu.memory_space<vmem>>, vector<1x128xf32>
    %4 = vector.broadcast %3 : vector<1x128xf32> to vector<256x128xf32>
    %5 = arith.addf %2, %4 : vector<256x128xf32>
    %cst_5 = arith.constant 0.000000e+00 : f32
    %6 = vector.broadcast %cst_5 : f32 to vector<256x128xf32>
    %7 = arith.maximumf %5, %6 : vector<256x128xf32>
    %c0_6 = arith.constant 0 : index
    %c0_7 = arith.constant 0 : index
    %8 = vector.load %arg5[%c0_6, %c0_7] : memref<256x128xf32, #tpu.memory_space<vmem>>, vector<256x128xf32>
    tpu.vector_store %arg5[%c0_6, %c0_7], %7 {strides = array<i32>} : memref<256x128xf32, #tpu.memory_space<vmem>>, vector<256x128xf32>,
    return
  }
  func.func @transform_0(%arg0: i32, %arg1: i32) -> (i32, i32) {
    %c0_i32 = arith.constant 0 : i32
    %c0_i32_0 = arith.constant 0 : i32
    return %arg0, %c0_i32 : i32, i32
  }
  func.func @transform_1(%arg0: i32, %arg1: i32) -> (i32, i32) {
    %c0_i32 = arith.constant 0 : i32
    %c0_i32_0 = arith.constant 0 : i32
    return %c0_i32, %arg1 : i32, i32
  }
  func.func @transform_2(%arg0: i32, %arg1: i32) -> (i32, i32) {
    %c0_i32 = arith.constant 0 : i32
    %c0_i32_0 = arith.constant 0 : i32
    return %c0_i32, %arg1 : i32, i32
  }
  func.func @transform_3(%arg0: i32, %arg1: i32) -> (i32, i32) {
    %c0_i32 = arith.constant 0 : i32
    return %arg0, %arg1 : i32, i32
  }
}

</mosaic_0001>

<bundles_post_ra>
// kernel: conv_bn_relu_forward.1
= control target key start
LH: loop header
LB: loop body
LE: loop exit
PB: predicated region body
PF: predicated region fallthrough
CT: control target
= control target key end

     0   :  { %s985_s12 = smov 0   ;;  %s987_s13 = smov 0   ;;  %s1181_s0 = inlined_call_operand.vmem [shape: f32[512,36], index: 0, kind: input, shape index: {}]   ;;  %s1182_s1 = inlined_call_operand.vmem [shape: f32[36,128], index: 1, kind: input, shape index: {}]   ;;  %s1183_s2 = inlined_call_operand.vmem [shape: f32[1,128], index: 2, kind: input, shape index: {}]   ;;  %s1184_s3 = inlined_call_operand.vmem [shape: f32[512,128], index: 3, kind: output, shape index: {}]  }
   0x1   :  { %s989_s14 = smov 0  }
   0x2 LB: > { %s25_s15 = sadd.s32 1, %s959_s13  ;;  %p767_p0 = scmp.ge.s32.totalorder %s963_s14, 1  ;;  %s963_s14 = sphi %s989_s14, %s13_s14   ;;  %s959_s13 = sphi %s987_s13, %s1186_s13   ;;  %s955_s12 = sphi %s985_s12, %s1185_s12  }
   0x3   : > { %p27_p1 = scmp.ge.s32.totalorder %s25_s15, 2  ;;  %p169_p2 = scmp.lt.s32.totalorder %s963_s14, 3 }
   0x5   : > { %s1188_s15 = smov (%p27_p1, %s25_s15), 0  ;;  %p170_p3 = pnand %p767_p0, %p169_p2 }
   0x6   : > { %v257_v0 = vld [vmem:[%s1182_s1] sm:$0xff] (!%p170_p3)  ;;  %v258_v1 = vld [vmem:[%s1182_s1 + $0x8] sm:$0xff] (!%p170_p3)  ;;  %v259_v2 = vld [vmem:[%s1182_s1 + $0x10] sm:$0xff] (!%p170_p3)  ;;  %s768_s22 = sshll.u32 (!%p170_p3), %s955_s12, 5  ;;  %vm366_vm0 = vcmask (!%p170_p3), 1043456   ;;  %vm269_vm1 = vcmask (!%p170_p3), 293888  }
   0x7   : > { %173 = sbr.rel (%p170_p3) target bundleno = 266 (0x10a), region = 32  ;;  %v903_v3 = vpack.c.bf16 (!%p170_p3), %v258_v1, %v257_v0  ;;  %v260_v4 = vld [vmem:[%s1182_s1 + $0x18] sm:$0xff] (!%p170_p3)  ;;  %p204_p4 = scmp.lt.s32.totalorder (!%p170_p3), %s768_s22, 63  ;;  %v261_v6 = vld [vmem:[%s1182_s1 + $0x20] sm:$0xf] (!%p170_p3) }
   0x8   : > { %v907_v5 = vpack.c.bf16 (!%p170_p3), %v260_v4, %v259_v2  ;;  %v1099_v39 = vld [vmem:[%s1183_s2] ss:$0 sm:$0xff] (!%p170_p3) }
   0x9   : > { %904 = vmatprep.subr.bf16.mxu0 (!%p170_p3), %v903_v3  ;;  %911 = vmatprep.subr.bf16.mxu1 (!%p170_p3), %v903_v3 }
   0xa   : > { %906 = vmatpush3.bf16.msra.mxu0 (!%p170_p3), %v903_v3  ;;  %914 = vmatpush3.bf16.msra.mxu1 (!%p170_p3), %v903_v3 }
   0xb   : > { %908 = vmatprep.subr.bf16.mxu0 (!%p170_p3), %v907_v5  ;;  %912 = vmatprep.subr.bf16.mxu1 (!%p170_p3), %v907_v5 }
   0xe   : > { %s1190_s22 = smov (!%p204_p4, %s768_s22), 63  ;;  %910 = vmatpush3.bf16.msra.mxu0 %v907_v5  ;;  %915 = vmatpush3.bf16.msra.mxu1 %v907_v5 }
   0xf   : > { %s769_s25 = sshll.u32 %s1190_s22, 3  ;;  %853 = vmatprep.subr.msk.mxu0 %vm366_vm0, %v261_v6  ;;  %913 = vmatprep.subr.msk.mxu1 %vm366_vm0, %v261_v6 }
  0x10   : > { %s1026_s30 = scalar_lea.vmem %s1181_s0, %s769_s25  ;;  %s1108_s8 = scalar_lea.vmem %s1184_s3, %s769_s25 }
  0x11   : > { %v225_v7 = vld [vmem:[%s1026_s30] sm:$0xff]  ;;  %v226_v9 = vld [vmem:[%s1026_s30 + $0x8] sm:$0xff]  ;;  %v227_v11 = vld [vmem:[%s1026_s30 + $0x10] sm:$0xff] }
  0x12   : > { %v241_v8 = vld [vmem:[%s1026_s30 + $0x80] sm:$0xff]  ;;  %855 = vmatprep.mubr.msk.f32.mxu0 %vm269_vm1, %v225_v7  ;;  %v242_v10 = vld [vmem:[%s1026_s30 + $0x88] sm:$0xff]  ;;  %v243_v12 = vld [vmem:[%s1026_s30 + $0x90] sm:$0xff]  ;;  %854 = vmatpush3.msk.msra.mxu0 %vm366_vm0, %v261_v6 }
  0x13   : > { %879 = vmatprep.mubr.msk.f32.mxu1 %vm269_vm1, %v241_v8  ;;  %916 = vmatpush3.msk.msra.mxu1 %vm366_vm0, %v261_v6  ;;  %v228_v13 = vld [vmem:[%s1026_s30 + $0x18] sm:$0xff]  ;;  %v229_v15 = vld [vmem:[%s1026_s30 + $0x20] sm:$0xff]  ;;  %v230_v17 = vld [vmem:[%s1026_s30 + $0x28] sm:$0xff] }
  0x14   : > { %856 = vmatmul.mubr.msk.f32.vlgmr.msra.gmra.mrb[0].mxu0 %vm269_vm1, %v226_v9  ;;  %880 = vmatmul.mubr.msk.f32.vlgmr.msra.gmra.mrb[0].mxu1 %vm269_vm1, %v242_v10  ;;  %v244_v14 = vld [vmem:[%s1026_s30 + $0x98] sm:$0xff]  ;;  %v245_v16 = vld [vmem:[%s1026_s30 + $0xa0] sm:$0xff]  ;;  %v246_v18 = vld [vmem:[%s1026_s30 + $0xa8] sm:$0xff] }
  0x15   : > { %858 = vmatprep.mubr.msk.f32.mxu0 %vm269_vm1, %v227_v11  ;;  %882 = vmatprep.mubr.msk.f32.mxu1 %vm269_vm1, %v243_v12  ;;  %v231_v19 = vld [vmem:[%s1026_s30 + $0x30] sm:$0xff]  ;;  %v232_v21 = vld [vmem:[%s1026_s30 + $0x38] sm:$0xff]  ;;  %v233_v23 = vld [vmem:[%s1026_s30 + $0x40] sm:$0xff] }
  0x16   : > { %v247_v20 = vld [vmem:[%s1026_s30 + $0xb0] sm:$0xff]  ;;  %v248_v22 = vld [vmem:[%s1026_s30 + $0xb8] sm:$0xff]  ;;  %v249_v24 = vld [vmem:[%s1026_s30 + $0xc0] sm:$0xff] }
  0x17   : > { %v234_v25 = vld [vmem:[%s1026_s30 + $0x48] sm:$0xff]  ;;  %v235_v27 = vld [vmem:[%s1026_s30 + $0x50] sm:$0xff]  ;;  %v236_v29 = vld [vmem:[%s1026_s30 + $0x58] sm:$0xff] }
  0x18   : > { %859 = vmatmul.mubr.msk.f32.gmra.mrb[2].mxu0 %vm269_vm1, %v228_v13  ;;  %883 = vmatmul.mubr.msk.f32.gmra.mrb[2].mxu1 %vm269_vm1, %v244_v14  ;;  %v250_v26 = vld [vmem:[%s1026_s30 + $0xc8] sm:$0xff]  ;;  %v251_v28 = vld [vmem:[%s1026_s30 + $0xd0] sm:$0xff]  ;;  %v252_v30 = vld [vmem:[%s1026_s30 + $0xd8] sm:$0xff] }
  0x19   : > { %861 = vmatprep.mubr.msk.f32.mxu0 %vm269_vm1, %v229_v15  ;;  %885 = vmatprep.mubr.msk.f32.mxu1 %vm269_vm1, %v245_v16  ;;  %v237_v31 = vld [vmem:[%s1026_s30 + $0x60] sm:$0xff]  ;;  %v238_v33 = vld [vmem:[%s1026_s30 + $0x68] sm:$0xff]  ;;  %v239_v35 = vld [vmem:[%s1026_s30 + $0x70] sm:$0xff] }
  0x1a   : > { %v253_v32 = vld [vmem:[%s1026_s30 + $0xe0] sm:$0xff]  ;;  %v254_v34 = vld [vmem:[%s1026_s30 + $0xe8] sm:$0xff]  ;;  %v255_v36 = vld [vmem:[%s1026_s30 + $0xf0] sm:$0xff] }
  0x1b   : > { %v240_v37 = vld [vmem:[%s1026_s30 + $0x78] sm:$0xff] }
  0x1c   : > { %862 = vmatmul.mubr.msk.f32.gmra.mrb[4].mxu0 %vm269_vm1, %v230_v17  ;;  %886 = vmatmul.mubr.msk.f32.gmra.mrb[4].mxu1 %vm269_vm1, %v246_v18  ;;  %v256_v38 = vld [vmem:[%s1026_s30 + $0xf8] sm:$0xff] }
  0x1d   : > { %864 = vmatprep.mubr.msk.f32.mxu0 %vm269_vm1, %v231_v19  ;;  %888 = vmatprep.mubr.msk.f32.mxu1 %vm269_vm1, %v247_v20 }
  0x20   : > { %865 = vmatmul.mubr.msk.f32.gmra.mrb[6].mxu0 %vm269_vm1, %v232_v21  ;;  %889 = vmatmul.mubr.msk.f32.gmra.mrb[6].mxu1 %vm269_vm1, %v248_v22 }
  0x21   : > { %867 = vmatprep.mubr.msk.f32.mxu0 %vm269_vm1, %v233_v23  ;;  %891 = vmatprep.mubr.msk.f32.mxu1 %vm269_vm1, %v249_v24 }
  0x24   : > { %868 = vmatmul.mubr.msk.f32.gmra.mrb[8].mxu0 %vm269_vm1, %v234_v25  ;;  %892 = vmatmul.mubr.msk.f32.gmra.mrb[8].mxu1 %vm269_vm1, %v250_v26 }
  0x25   : > { %870 = vmatprep.mubr.msk.f32.mxu0 %vm269_vm1, %v235_v27  ;;  %894 = vmatprep.mubr.msk.f32.mxu1 %vm269_vm1, %v251_v28 }
  0x28   : > { %871 = vmatmul.mubr.msk.f32.gmra.mrb[10].mxu0 %vm269_vm1, %v236_v29  ;;  %895 = vmatmul.mubr.msk.f32.gmra.mrb[10].mxu1 %vm269_vm1, %v252_v30 }
  0x29   : > { %873 = vmatprep.mubr.msk.f32.mxu0 %vm269_vm1, %v237_v31  ;;  %897 = vmatprep.mubr.msk.f32.mxu1 %vm269_vm1, %v253_v32 }
  0x2c   : > { %874 = vmatmul.mubr.msk.f32.gmra.mrb[12].mxu0 %vm269_vm1, %v238_v33  ;;  %898 = vmatmul.mubr.msk.f32.gmra.mrb[12].mxu1 %vm269_vm1, %v254_v34 }
  0x2d   : > { %876 = vmatprep.mubr.msk.f32.mxu0 %vm269_vm1, %v239_v35  ;;  %900 = vmatprep.mubr.msk.f32.mxu1 %vm269_vm1, %v255_v36 }
  0x30   : > { %877 = vmatmul.mubr.msk.f32.gmra.mrb[14].mxu0 %vm269_vm1, %v240_v37  ;;  %901 = vmatmul.mubr.msk.f32.gmra.mrb[14].mxu1 %vm269_vm1, %v256_v38 }
  0xe7   : > { %v857_v40 = vpop.f32.mrb[0].mxu0  ;;  %v881_v41 = vpop.f32.mrb[0].mxu1 }
  0xe8   : > { %v442_v42 = vadd.f32 %v857_v40, %v1099_v39  ;;  %v522_v43 = vadd.f32 %v881_v41, %v1099_v39  ;;  %v436_v44 = vpop.f32.mrb[1].mxu0  ;;  %v516_v45 = vpop.f32.mrb[1].mxu1 }
  0xe9   : > { %v437_v46 = vadd.f32 %v1099_v39, %v436_v44  ;;  %v517_v47 = vadd.f32 %v1099_v39, %v516_v45 }
  0xea   : > { %v596_v48 = vmax.f32 %v442_v42, 0.0  ;;  %v612_v49 = vmax.f32 %v522_v43, 0.0 }
  0xeb   : > { %v595_v50 = vmax.f32 %v437_v46, 0.0  ;;  %v611_v51 = vmax.f32 %v517_v47, 0.0  ;;  %v860_v52 = vpop.f32.mrb[2].mxu0  ;;  %v884_v53 = vpop.f32.mrb[2].mxu1 }
  0xec   : > { %628 = vst [vmem:[%s1108_s8 + $0x8] sm:$0xff] %v596_v48  ;;  %644 = vst [vmem:[%s1108_s8 + $0x88] sm:$0xff] %v612_v49  ;;  %v452_v54 = vadd.f32 %v860_v52, %v1099_v39  ;;  %v532_v55 = vadd.f32 %v884_v53, %v1099_v39  ;;  %v446_v56 = vpop.f32.mrb[3].mxu0  ;;  %v526_v57 = vpop.f32.mrb[3].mxu1 }
  0xed   : > { %627 = vst [vmem:[%s1108_s8] sm:$0xff] %v595_v50  ;;  %643 = vst [vmem:[%s1108_s8 + $0x80] sm:$0xff] %v611_v51  ;;  %v447_v58 = vadd.f32 %v1099_v39, %v446_v56  ;;  %v527_v59 = vadd.f32 %v1099_v39, %v526_v57 }
  0xee   : > { %v598_v60 = vmax.f32 %v452_v54, 0.0  ;;  %v614_v61 = vmax.f32 %v532_v55, 0.0 }
  0xef   : > { %v597_v62 = vmax.f32 %v447_v58, 0.0  ;;  %v613_v63 = vmax.f32 %v527_v59, 0.0  ;;  %v863_v0 = vpop.f32.mrb[4].mxu0  ;;  %v887_v1 = vpop.f32.mrb[4].mxu1 }
  0xf0   : > { %630 = vst [vmem:[%s1108_s8 + $0x18] sm:$0xff] %v598_v60  ;;  %646 = vst [vmem:[%s1108_s8 + $0x98] sm:$0xff] %v614_v61  ;;  %v462_v2 = vadd.f32 %v863_v0, %v1099_v39  ;;  %v542_v3 = vadd.f32 %v887_v1, %v1099_v39  ;;  %v456_v4 = vpop.f32.mrb[5].mxu0  ;;  %v536_v5 = vpop.f32.mrb[5].mxu1 }
  0xf1   : > { %629 = vst [vmem:[%s1108_s8 + $0x10] sm:$0xff] %v597_v62  ;;  %645 = vst [vmem:[%s1108_s8 + $0x90] sm:$0xff] %v613_v63  ;;  %v457_v6 = vadd.f32 %v1099_v39, %v456_v4  ;;  %v537_v7 = vadd.f32 %v1099_v39, %v536_v5 }
  0xf2   : > { %v600_v8 = vmax.f32 %v462_v2, 0.0  ;;  %v616_v9 = vmax.f32 %v542_v3, 0.0 }
  0xf3   : > { %v599_v10 = vmax.f32 %v457_v6, 0.0  ;;  %v615_v11 = vmax.f32 %v537_v7, 0.0  ;;  %v866_v12 = vpop.f32.mrb[6].mxu0  ;;  %v890_v13 = vpop.f32.mrb[6].mxu1 }
  0xf4   : > { %632 = vst [vmem:[%s1108_s8 + $0x28] sm:$0xff] %v600_v8  ;;  %648 = vst [vmem:[%s1108_s8 + $0xa8] sm:$0xff] %v616_v9  ;;  %v472_v14 = vadd.f32 %v866_v12, %v1099_v39  ;;  %v552_v15 = vadd.f32 %v890_v13, %v1099_v39  ;;  %v466_v16 = vpop.f32.mrb[7].mxu0  ;;  %v546_v17 = vpop.f32.mrb[7].mxu1 }
  0xf5   : > { %631 = vst [vmem:[%s1108_s8 + $0x20] sm:$0xff] %v599_v10  ;;  %647 = vst [vmem:[%s1108_s8 + $0xa0] sm:$0xff] %v615_v11  ;;  %v467_v18 = vadd.f32 %v1099_v39, %v466_v16  ;;  %v547_v19 = vadd.f32 %v1099_v39, %v546_v17 }
  0xf6   : > { %v602_v20 = vmax.f32 %v472_v14, 0.0  ;;  %v618_v21 = vmax.f32 %v552_v15, 0.0 }
  0xf7   : > { %v601_v22 = vmax.f32 %v467_v18, 0.0  ;;  %v617_v23 = vmax.f32 %v547_v19, 0.0  ;;  %v869_v24 = vpop.f32.mrb[8].mxu0  ;;  %v893_v25 = vpop.f32.mrb[8].mxu1 }
  0xf8   : > { %634 = vst [vmem:[%s1108_s8 + $0x38] sm:$0xff] %v602_v20  ;;  %650 = vst [vmem:[%s1108_s8 + $0xb8] sm:$0xff] %v618_v21  ;;  %v482_v26 = vadd.f32 %v869_v24, %v1099_v39  ;;  %v562_v27 = vadd.f32 %v893_v25, %v1099_v39  ;;  %v476_v28 = vpop.f32.mrb[9].mxu0  ;;  %v556_v29 = vpop.f32.mrb[9].mxu1 }
  0xf9   : > { %633 = vst [vmem:[%s1108_s8 + $0x30] sm:$0xff] %v601_v22  ;;  %649 = vst [vmem:[%s1108_s8 + $0xb0] sm:$0xff] %v617_v23  ;;  %v477_v30 = vadd.f32 %v1099_v39, %v476_v28  ;;  %v557_v31 = vadd.f32 %v1099_v39, %v556_v29 }
  0xfa   : > { %v604_v32 = vmax.f32 %v482_v26, 0.0  ;;  %v620_v33 = vmax.f32 %v562_v27, 0.0 }
  0xfb   : > { %v603_v34 = vmax.f32 %v477_v30, 0.0  ;;  %v619_v35 = vmax.f32 %v557_v31, 0.0  ;;  %v872_v36 = vpop.f32.mrb[10].mxu0  ;;  %v896_v37 = vpop.f32.mrb[10].mxu1 }
  0xfc   : > { %636 = vst [vmem:[%s1108_s8 + $0x48] sm:$0xff] %v604_v32  ;;  %652 = vst [vmem:[%s1108_s8 + $0xc8] sm:$0xff] %v620_v33  ;;  %v492_v38 = vadd.f32 %v872_v36, %v1099_v39  ;;  %v572_v40 = vadd.f32 %v896_v37, %v1099_v39  ;;  %v486_v41 = vpop.f32.mrb[11].mxu0  ;;  %v566_v42 = vpop.f32.mrb[11].mxu1 }
  0xfd   : > { %635 = vst [vmem:[%s1108_s8 + $0x40] sm:$0xff] %v603_v34  ;;  %651 = vst [vmem:[%s1108_s8 + $0xc0] sm:$0xff] %v619_v35  ;;  %v487_v43 = vadd.f32 %v1099_v39, %v486_v41  ;;  %v567_v44 = vadd.f32 %v1099_v39, %v566_v42 }
  0xfe   : > { %v606_v45 = vmax.f32 %v492_v38, 0.0  ;;  %v622_v46 = vmax.f32 %v572_v40, 0.0 }
  0xff   : > { %v605_v47 = vmax.f32 %v487_v43, 0.0  ;;  %v621_v48 = vmax.f32 %v567_v44, 0.0  ;;  %v875_v49 = vpop.f32.mrb[12].mxu0  ;;  %v899_v50 = vpop.f32.mrb[12].mxu1 }
 0x100   : > { %638 = vst [vmem:[%s1108_s8 + $0x58] sm:$0xff] %v606_v45  ;;  %654 = vst [vmem:[%s1108_s8 + $0xd8] sm:$0xff] %v622_v46  ;;  %v502_v51 = vadd.f32 %v875_v49, %v1099_v39  ;;  %v582_v52 = vadd.f32 %v899_v50, %v1099_v39  ;;  %v496_v53 = vpop.f32.mrb[13].mxu0  ;;  %v576_v54 = vpop.f32.mrb[13].mxu1 }
 0x101   : > { %637 = vst [vmem:[%s1108_s8 + $0x50] sm:$0xff] %v605_v47  ;;  %653 = vst [vmem:[%s1108_s8 + $0xd0] sm:$0xff] %v621_v48  ;;  %v497_v55 = vadd.f32 %v1099_v39, %v496_v53  ;;  %v577_v56 = vadd.f32 %v1099_v39, %v576_v54 }
 0x102   : > { %v608_v57 = vmax.f32 %v502_v51, 0.0  ;;  %v624_v58 = vmax.f32 %v582_v52, 0.0 }
 0x103   : > { %v607_v59 = vmax.f32 %v497_v55, 0.0  ;;  %v623_v60 = vmax.f32 %v577_v56, 0.0  ;;  %v878_v61 = vpop.f32.mrb[14].mxu0  ;;  %v902_v62 = vpop.f32.mrb[14].mxu1 }
 0x104   : > { %640 = vst [vmem:[%s1108_s8 + $0x68] sm:$0xff] %v608_v57  ;;  %656 = vst [vmem:[%s1108_s8 + $0xe8] sm:$0xff] %v624_v58  ;;  %v512_v63 = vadd.f32 %v878_v61, %v1099_v39  ;;  %v592_v0 = vadd.f32 %v902_v62, %v1099_v39  ;;  %v506_v1 = vpop.f32.mrb[15].mxu0  ;;  %v586_v2 = vpop.f32.mrb[15].mxu1 }
 0x105   : > { %639 = vst [vmem:[%s1108_s8 + $0x60] sm:$0xff] %v607_v59  ;;  %655 = vst [vmem:[%s1108_s8 + $0xe0] sm:$0xff] %v623_v60  ;;  %v507_v3 = vadd.f32 %v1099_v39, %v506_v1  ;;  %v587_v4 = vadd.f32 %v1099_v39, %v586_v2 }
 0x106   : > { %v610_v5 = vmax.f32 %v512_v63, 0.0  ;;  %v626_v6 = vmax.f32 %v592_v0, 0.0 }
 0x107   : > { %v609_v7 = vmax.f32 %v507_v3, 0.0  ;;  %v625_v8 = vmax.f32 %v587_v4, 0.0 }
 0x108   : > { %642 = vst [vmem:[%s1108_s8 + $0x78] sm:$0xff] %v610_v5  ;;  %658 = vst [vmem:[%s1108_s8 + $0xf8] sm:$0xff] %v626_v6 }
 0x109   : > { %641 = vst [vmem:[%s1108_s8 + $0x70] sm:$0xff] %v609_v7  ;;  %657 = vst [vmem:[%s1108_s8 + $0xf0] sm:$0xff] %v625_v8 }
 0x10a PF: > { %s13_s14 = sadd.s32 1, %s963_s14   ;;  %s1185_s12 = smov %s959_s13 }
 0x10b   : > { %p10_p5 = scmp.ge.s32.totalorder %s13_s14, 4   ;;  %s1186_s13 = smov %s1188_s15 }
 0x10d   :  { %12 = sbr.rel (!%p10_p5) target bundleno = 2 (0x2), region = 68 }

</bundles_post_ra>
